<compile_context>
chip_gen: v7x
topology: tpu7x:2x2x1
jax: 0.10.0
libtpu: 0.0.40
codegen_flags: <defaults>
</compile_context>

<pallas_src>
import jax
import jax.numpy as jnp
from jax.experimental import pallas as pl
from jax.experimental.pallas import tpu as pltpu

# ----------------------------- small config ----------------------------------
B = 2
IN_CHANS = 3
IMG_SIZE = 32          # H == W (small version of img_size=224)
PATCH = 16             # kernel == stride -> non-overlapping patches
EMBED_DIM = 128        # lane-dense embed dim (small version of 768)

GRID_H = IMG_SIZE // PATCH
GRID_W = IMG_SIZE // PATCH
NUM_PATCHES = GRID_H * GRID_W
K_DIM = IN_CHANS * PATCH * PATCH   # im2col contraction dim = 768


def _round_up(x, m):
    return (x + m - 1) // m * m


def _choose_tm(m):
    """Largest tile <= 512 rows (multiple of 8) dividing m with >= 2 tiles.

    Falls back to a single full-M tile when m is too small to split (m <= 8).
    Ensuring >= 2 tiles lets v7x's two TensorCores both get work on the
    "parallel" M axis; picking a divisor of m avoids padding the patches matrix.
    """
    best = m
    for tm in range(8, min(m // 2, 512) + 1, 8):
        if m % tm == 0:
            best = tm          # ascending loop -> ends at the largest divisor
    return best


# ----------------------------- Pallas kernel ---------------------------------
def patch_embed_kernel(x_ref, w_ref, b_ref, o_ref):
    """One M tile: (tm, K) bf16 @ (K, Np) bf16 -> f32, + f32 bias, store.

    grid = (M_tiles,). Weight and bias blocks have constant index maps, so they
    are fetched once and stay resident in VMEM across all M tiles. K is a
    single block -> no accumulator scratch, no pl.when phases.
    """
    acc = jnp.dot(x_ref[...], w_ref[...], preferred_element_type=jnp.float32)
    o_ref[...] = (acc + b_ref[...]).astype(o_ref.dtype)


def _patch_proj(patches, w, b, *, tm):
    """patches: (M, K) bf16, w: (K, Np) bf16, b: (1, Np) f32 -> (M, Np) f32."""
    M, K = patches.shape
    Np = w.shape[1]
    return pl.pallas_call(
        patch_embed_kernel,
        out_shape=jax.ShapeDtypeStruct((M, Np), jnp.float32),
        grid_spec=pltpu.PrefetchScalarGridSpec(
            num_scalar_prefetch=0,
            grid=(M // tm,),
            in_specs=[
                pl.BlockSpec((tm, K), lambda i: (i, 0)),
                pl.BlockSpec((K, Np), lambda i: (0, 0)),   # resident weight
                pl.BlockSpec((1, Np), lambda i: (0, 0)),   # resident bias
            ],
            out_specs=pl.BlockSpec((tm, Np), lambda i: (i, 0)),
        ),
        compiler_params=pltpu.CompilerParams(
            dimension_semantics=("parallel",)),
    )(patches, w, b)


# ----------------------------- params -----------------------------------------
def init_params(key):
    kw, kb = jax.random.split(key)
    return {
        # Conv2d(in_chans, embed_dim, kernel_size=PATCH, stride=PATCH)
        "proj_w": (0.02 * jax.random.normal(
            kw, (EMBED_DIM, IN_CHANS, PATCH, PATCH))).astype(jnp.float32),
        "proj_b": (0.02 * jax.random.normal(
            kb, (EMBED_DIM,))).astype(jnp.float32),
    }


def prepack_params(params):
    """One-time weight prep (out of the jitted forward).

    Conv2d weight (D, C, P, P) -> matmul weight (C*P*P, Np) bf16, bias -> (1, Np)
    f32, with Np = D rounded up to a multiple of 128 (lane-dense output / full
    MXU tile).  The raw Conv2d-layout tensors are kept for the reference check.
    """
    D, C, P, _ = params["proj_w"].shape
    K = C * P * P
    Np = _round_up(D, 128)
    w = params["proj_w"].reshape(D, K).T          # (K, D), f32
    b = params["proj_b"].reshape(1, D)            # (1, D), f32
    if Np != D:
        w = jnp.pad(w, ((0, 0), (0, Np - D)))
        b = jnp.pad(b, ((0, 0), (0, Np - D)))
    out = dict(params)
    out["proj_w_kn"] = w.astype(jnp.bfloat16)     # bf16 MXU operand
    out["proj_b_1n"] = b.astype(jnp.float32)      # f32 bias (added post-accum)
    return out


# ----------------------------- forward ----------------------------------------
def patch_embed_forward(params, x):
    """x: (B, C, H, W) -> (B, num_patches, embed_dim), matching the PyTorch module."""
    Bx, C, H, W = x.shape
    P = PATCH
    gh, gw = H // P, W // P
    num_patches = gh * gw
    K = C * P * P
    D = params["proj_w"].shape[0]                 # static (shape metadata)

    # im2col: stride == kernel -> pure layout transform, each element read once.
    # (B, C, gh, P, gw, P) -> (B, gh, gw, C, P, P) -> (B*num_patches, K), cast
    # to bf16 so XLA emits a single fusion producing the half-width operand.
    patches = x.reshape(Bx, C, gh, P, gw, P)
    patches = patches.transpose(0, 2, 4, 1, 3, 5)
    patches = patches.reshape(Bx * num_patches, K).astype(jnp.bfloat16)

    M = Bx * num_patches
    Mp = _round_up(M, 8)
    if Mp != M:                                   # partial sublane tile only
        patches = jnp.pad(patches, ((0, Mp - M), (0, 0)))
    tm = _choose_tm(Mp)

    out = _patch_proj(patches, params["proj_w_kn"], params["proj_b_1n"], tm=tm)
    return out[:M, :D].reshape(Bx, num_patches, D)


# ----------------------------- main --------------------------------------------
if __name__ == "__main__":
    key = jax.random.PRNGKey(0)
    pkey, xkey = jax.random.split(key)
    params = prepack_params(init_params(pkey))
    x = jax.random.normal(xkey, (B, IN_CHANS, IMG_SIZE, IMG_SIZE),
                          dtype=jnp.float32)

    out = jax.jit(patch_embed_forward)(params, x)
    jax.block_until_ready(out)

    assert out.shape == (B, NUM_PATCHES, EMBED_DIM), out.shape
    assert jnp.all(jnp.isfinite(out))

    # Cross-check against XLA's Conv2d (same semantics as the PyTorch module).
    ref = jax.lax.conv_general_dilated(
        x, params["proj_w"], window_strides=(PATCH, PATCH), padding="VALID",
        dimension_numbers=("NCHW", "OIHW", "NCHW"))
    ref = ref + params["proj_b"][None, :, None, None]
    ref = ref.reshape(B, EMBED_DIM, NUM_PATCHES).transpose(0, 2, 1)
    # bf16 operands with f32 accumulation: <~0.5% relative error vs f32 conv.
    assert jnp.allclose(out, ref, rtol=2e-2, atol=2e-2), \
        float(jnp.max(jnp.abs(out - ref)))

    print("KERNEL_OK")
</pallas_src>

<mosaic_0001>
module attributes {stable_mosaic.version = 11 : i64} {
  func.func @patch_embed_kernel(%arg0: i32, %arg1: memref<8x768xbf16, #tpu.memory_space<vmem>>, %arg2: memref<768x128xbf16, #tpu.memory_space<vmem>>, %arg3: memref<1x128xf32, #tpu.memory_space<vmem>>, %arg4: memref<8x128xf32, #tpu.memory_space<vmem>>) attributes {dimension_semantics = [#tpu.dimension_semantics<parallel>], iteration_bounds = array<i64: 1>, scalar_prefetch = 0 : i64, scratch_operands = 0 : i64, tpu.core_type = #tpu.core_type<tc>, window_params = [{transform_indices = @transform_0, window_bounds = array<i64: 8, 768>}, {pipeline_mode = #tpu.pipeline_mode<synchronous>, transform_indices = @transform_1, window_bounds = array<i64: 768, 128>}, {pipeline_mode = #tpu.pipeline_mode<synchronous>, transform_indices = @transform_2, window_bounds = array<i64: 1, 128>}, {transform_indices = @transform_3, window_bounds = array<i64: 8, 128>}]} {
    %c0 = arith.constant 0 : index
    %c0_0 = arith.constant 0 : index
    %0 = vector.load %arg1[%c0, %c0_0] : memref<8x768xbf16, #tpu.memory_space<vmem>>, vector<8x768xbf16>
    %c0_1 = arith.constant 0 : index
    %c0_2 = arith.constant 0 : index
    %1 = vector.load %arg2[%c0_1, %c0_2] : memref<768x128xbf16, #tpu.memory_space<vmem>>, vector<768x128xbf16>
    %cst = arith.constant dense<0.000000e+00> : vector<8x128xf32>
    %2 = tpu.matmul %0, %1, %cst {dimension_numbers = #tpu.dot_dimension_numbers<[1], [0], [0], [1], [0, 0, 1, 1], [], []>} : vector<8x768xbf16>, vector<768x128xbf16>, vector<8x128xf32> -> vector<8x128xf32>
    %c0_3 = arith.constant 0 : index
    %c0_4 = arith.constant 0 : index
    %3 = vector.load %arg3[%c0_3, %c0_4] : memref<1x128xf32, #tpu.memory_space<vmem>>, vector<1x128xf32>
    %4 = vector.broadcast %3 : vector<1x128xf32> to vector<8x128xf32>
    %5 = arith.addf %2, %4 : vector<8x128xf32>
    %c0_5 = arith.constant 0 : index
    %c0_6 = arith.constant 0 : index
    %6 = vector.load %arg4[%c0_5, %c0_6] : memref<8x128xf32, #tpu.memory_space<vmem>>, vector<8x128xf32>
    tpu.vector_store %arg4[%c0_5, %c0_6], %5 {strides = array<i32>} : memref<8x128xf32, #tpu.memory_space<vmem>>, vector<8x128xf32>,
    return
  }
  func.func @transform_0(%arg0: i32) -> (i32, i32) {
    %c0_i32 = arith.constant 0 : i32
    %c0_i32_0 = arith.constant 0 : i32
    return %arg0, %c0_i32 : i32, i32
  }
  func.func @transform_1(%arg0: i32) -> (i32, i32) {
    %c0_i32 = arith.constant 0 : i32
    %c0_i32_0 = arith.constant 0 : i32
    %c0_i32_1 = arith.constant 0 : i32
    return %c0_i32, %c0_i32_0 : i32, i32
  }
  func.func @transform_2(%arg0: i32) -> (i32, i32) {
    %c0_i32 = arith.constant 0 : i32
    %c0_i32_0 = arith.constant 0 : i32
    %c0_i32_1 = arith.constant 0 : i32
    return %c0_i32, %c0_i32_0 : i32, i32
  }
  func.func @transform_3(%arg0: i32) -> (i32, i32) {
    %c0_i32 = arith.constant 0 : i32
    %c0_i32_0 = arith.constant 0 : i32
    return %arg0, %c0_i32 : i32, i32
  }
}

</mosaic_0001>

<bundles_post_ra>
// kernel: patch_embed_forward.1
= control target key start
LH: loop header
LB: loop body
LE: loop exit
PB: predicated region body
PF: predicated region fallthrough
CT: control target
= control target key end

     0   :  { %s955_s0 = inlined_call_operand.vmem [shape: bf16[8,768], index: 0, kind: input, shape index: {}]   ;;  %s956_s1 = inlined_call_operand.vmem [shape: bf16[768,128], index: 1, kind: input, shape index: {}]   ;;  %s957_s2 = inlined_call_operand.vmem [shape: f32[1,128], index: 2, kind: input, shape index: {}]   ;;  %s958_s3 = inlined_call_operand.hbm [shape: f32[8,128], index: 3, kind: output, shape index: {}]  }
   0x1   :  { %v688_v0 = vld [vmem:[%s956_s1 + $0x40] sm:$0xff]   ;;  %v692_v4 = vld [vmem:[%s956_s1 + $0x48] sm:$0xff]   ;;  %v696_v8 = vld [vmem:[%s956_s1 + $0x50] sm:$0xff]  }
   0x2   :  { %v689_v1 = vld [vmem:[%s956_s1] sm:$0xff]   ;;  %621 = vmatprep.subr.bf16.mxu0 %v688_v0  ;;  %v693_v5 = vld [vmem:[%s956_s1 + $0x8] sm:$0xff]   ;;  %v697_v9 = vld [vmem:[%s956_s1 + $0x10] sm:$0xff]  }
   0x3   :  { %v690_v2 = vld [vmem:[%s956_s1 + $0xc0] sm:$0xff]   ;;  %622 = vmatpush3.bf16.msra.mxu0 %v689_v1  ;;  %v694_v6 = vld [vmem:[%s956_s1 + $0xc8] sm:$0xff]   ;;  %v698_v10 = vld [vmem:[%s956_s1 + $0xd0] sm:$0xff]  }
   0x4   :  { %v691_v3 = vld [vmem:[%s956_s1 + $0x80] sm:$0xff]   ;;  %643 = vmatprep.subr.bf16.mxu1 %v690_v2  ;;  %623 = vmatprep.subr.bf16.mxu0 %v692_v4  ;;  %v695_v7 = vld [vmem:[%s956_s1 + $0x88] sm:$0xff]   ;;  %v699_v11 = vld [vmem:[%s956_s1 + $0x90] sm:$0xff]  }
   0x5   :  { %644 = vmatpush3.bf16.msra.mxu1 %v691_v3  ;;  %v700_v12 = vld [vmem:[%s956_s1 + $0x58] sm:$0xff]   ;;  %v704_v16 = vld [vmem:[%s956_s1 + $0x60] sm:$0xff]   ;;  %v708_v20 = vld [vmem:[%s956_s1 + $0x68] sm:$0xff]  }
   0x6   :  { %645 = vmatprep.subr.bf16.mxu1 %v694_v6  ;;  %v701_v13 = vld [vmem:[%s956_s1 + $0x18] sm:$0xff]   ;;  %v705_v17 = vld [vmem:[%s956_s1 + $0x20] sm:$0xff]   ;;  %v709_v21 = vld [vmem:[%s956_s1 + $0x28] sm:$0xff]  }
   0x7   :  { %624 = vmatpush3.bf16.msra.mxu0 %v693_v5  ;;  %v702_v14 = vld [vmem:[%s956_s1 + $0xd8] sm:$0xff]   ;;  %v706_v18 = vld [vmem:[%s956_s1 + $0xe0] sm:$0xff]   ;;  %v710_v22 = vld [vmem:[%s956_s1 + $0xe8] sm:$0xff]  }
   0x8   :  { %625 = vmatprep.subr.bf16.mxu0 %v696_v8  ;;  %v703_v15 = vld [vmem:[%s956_s1 + $0x98] sm:$0xff]   ;;  %v707_v19 = vld [vmem:[%s956_s1 + $0xa0] sm:$0xff]   ;;  %v711_v23 = vld [vmem:[%s956_s1 + $0xa8] sm:$0xff]  }
   0x9   :  { %646 = vmatpush3.bf16.msra.mxu1 %v695_v7  ;;  %v712_v24 = vld [vmem:[%s956_s1 + $0x70] sm:$0xff]   ;;  %v716_v28 = vld [vmem:[%s956_s1 + $0x78] sm:$0xff]   ;;  %v16_v31 = vld [vmem:[%s955_s0] sm:$0xff] }
   0xa   :  { %647 = vmatprep.subr.bf16.mxu1 %v698_v10  ;;  %v713_v25 = vld [vmem:[%s956_s1 + $0x30] sm:$0xff]   ;;  %v717_v29 = vld [vmem:[%s956_s1 + $0x38] sm:$0xff]   ;;  %v567_v32 = vcombine.low %v16_v31, %v16_v31  ;;  %v568_v33 = vcombine.high %v16_v31, %v16_v31  ;;  %v722_v35 = vld [vmem:[%s956_s1 + $0x140] sm:$0xff]  }
   0xb   :  { %626 = vmatpush3.bf16.msra.mxu0 %v697_v9  ;;  %v714_v26 = vld [vmem:[%s956_s1 + $0xf0] sm:$0xff]   ;;  %v718_v30 = vld [vmem:[%s956_s1 + $0xf8] sm:$0xff]   ;;  %v17_v36 = vld [vmem:[%s955_s0 + $0x8] sm:$0xff] }
   0xc   :  { %627 = vmatprep.subr.bf16.mxu0 %v700_v12  ;;  %v715_v27 = vld [vmem:[%s956_s1 + $0xb0] sm:$0xff]   ;;  %v721_v34 = vld [vmem:[%s956_s1 + $0xb8] sm:$0xff]   ;;  %463 = vmatprep.mubr.bf16.mxu0 %v568_v33  ;;  %v569_v37 = vcombine.low %v17_v36, %v17_v36  ;;  %v570_v38 = vcombine.high %v17_v36, %v17_v36  ;;  %v725_v39 = vld [vmem:[%s956_s1 + $0x100] sm:$0xff]  }
   0xd   :  { %648 = vmatpush3.bf16.msra.mxu1 %v699_v11  ;;  %v726_v40 = vld [vmem:[%s956_s1 + $0x148] sm:$0xff]   ;;  %v728_v42 = vld [vmem:[%s956_s1 + $0x150] sm:$0xff]   ;;  %v730_v44 = vld [vmem:[%s956_s1 + $0x158] sm:$0xff]  }
   0xe   :  { %649 = vmatprep.subr.bf16.mxu1 %v702_v14  ;;  %503 = vmatprep.mubr.bf16.mxu1 %v570_v38  ;;  %v727_v41 = vld [vmem:[%s956_s1 + $0x108] sm:$0xff]   ;;  %v729_v43 = vld [vmem:[%s956_s1 + $0x110] sm:$0xff]   ;;  %v731_v45 = vld [vmem:[%s956_s1 + $0x118] sm:$0xff]  }
   0xf   :  { %628 = vmatpush3.bf16.msra.mxu0 %v701_v13  ;;  %v732_v46 = vld [vmem:[%s956_s1 + $0x160] sm:$0xff]   ;;  %v18_v48 = vld [vmem:[%s955_s0 + $0x10] sm:$0xff]  ;;  %v734_v49 = vld [vmem:[%s956_s1 + $0x168] sm:$0xff]  }
  0x10   :  { %629 = vmatprep.subr.bf16.mxu0 %v704_v16  ;;  %v733_v47 = vld [vmem:[%s956_s1 + $0x120] sm:$0xff]   ;;  %v572_v50 = vcombine.high %v18_v48, %v18_v48 }
  0x11   :  { %650 = vmatpush3.bf16.msra.mxu1 %v703_v15 }
  0x12   :  { %651 = vmatprep.subr.bf16.mxu1 %v706_v18 }
  0x13   :  { %630 = vmatpush3.bf16.msra.mxu0 %v705_v17 }
  0x14   :  { %631 = vmatprep.subr.bf16.mxu0 %v708_v20 }
  0x15   :  { %652 = vmatpush3.bf16.msra.mxu1 %v707_v19 }
  0x16   :  { %653 = vmatprep.subr.bf16.mxu1 %v710_v22 }
  0x17   :  { %632 = vmatpush3.bf16.msra.mxu0 %v709_v21 }
  0x18   :  { %633 = vmatprep.subr.bf16.mxu0 %v712_v24 }
  0x19   :  { %654 = vmatpush3.bf16.msra.mxu1 %v711_v23 }
  0x1a   :  { %655 = vmatprep.subr.bf16.mxu1 %v714_v26 }
  0x1b   :  { %634 = vmatpush3.bf16.msra.mxu0 %v713_v25 }
  0x1c   :  { %635 = vmatprep.subr.bf16.mxu0 %v716_v28 }
  0x1d   :  { %656 = vmatpush3.bf16.msra.mxu1 %v715_v27 }
  0x1e   :  { %657 = vmatprep.subr.bf16.mxu1 %v718_v30 }
  0x1f   :  { %636 = vmatpush3.bf16.msra.mxu0 %v717_v29 }
  0x20   :  { %665 = vmatprep.subr.bf16.mxu0 %v722_v35 }
  0x21   :  { %658 = vmatpush3.bf16.msra.mxu1 %v721_v34 }
  0x22   :  { %464 = vmatmul.mubr.bf16.vlgmr.msra.gmra.mrb[0].mxu0 %v567_v32 }
  0x23   :  { %666 = vmatpush3.bf16.msra.mxu0 %v725_v39 }
  0x24   :  { %504 = vmatmul.mubr.bf16.vlgmr.msra.gmra.mrb[0].mxu1 %v569_v37  ;;  %667 = vmatprep.subr.bf16.mxu0 %v726_v40 }
  0x27   :  { %668 = vmatpush3.bf16.msra.mxu0 %v727_v41 }
  0x28   :  { %669 = vmatprep.subr.bf16.mxu0 %v728_v42 }
  0x2b   :  { %670 = vmatpush3.bf16.msra.mxu0 %v729_v43 }
  0x2c   :  { %671 = vmatprep.subr.bf16.mxu0 %v730_v44 }
  0x2f   :  { %672 = vmatpush3.bf16.msra.mxu0 %v731_v45 }
  0x30   :  { %673 = vmatprep.subr.bf16.mxu0 %v732_v46 }
  0x31   :  { %8 = vsyncpa [#allocation3], 0  ;;  %543 = vmatprep.mubr.bf16.mxu0 %v572_v50  ;;  %v735_v51 = vld [vmem:[%s956_s1 + $0x128] sm:$0xff]   ;;  %v736_v52 = vld [vmem:[%s956_s1 + $0x170] sm:$0xff]   ;;  %v571_v56 = vcombine.low %v18_v48, %v18_v48 }
  0x32   :  { %v737_v53 = vld [vmem:[%s956_s1 + $0x130] sm:$0xff]   ;;  %v738_v54 = vld [vmem:[%s956_s1 + $0x178] sm:$0xff]   ;;  %v566_v58 = vld [vmem:[%s957_s2] ss:$0 sm:$0xff] }
  0x33   :  { %674 = vmatpush3.bf16.msra.mxu0 %v733_v47  ;;  %v739_v55 = vld [vmem:[%s956_s1 + $0x138] sm:$0xff]   ;;  %s766_s1 = smov [#allocation2]  }
  0x34   :  { %675 = vmatprep.subr.bf16.mxu0 %v734_v49  ;;  %s558_s7 = sshll.u32 %s766_s1, 4  ;;  %s559_s7 = int_to_ptr.vmem [resolvable:$true] %s558_s7 }
  0x35   :  { %s742_s2 = scalar_lea.vmem %s559_s7, 128  ;;  %p747_p1 = scmp.lt.s32.totalorder %s559_s7, %s559_s7 }
  0x36   :  { %p743_p0 = scmp.ne.s32.totalorder %s559_s7, %s742_s2  ;;  %p748_p2 = scmp.lt.s32.totalorder %s742_s2, %s742_s2 }
  0x37   :  { %676 = vmatpush3.bf16.msra.mxu0 %v735_v51 }
  0x38   :  { %677 = vmatprep.subr.bf16.mxu0 %v736_v52  ;;  %p749_p3 = por %p748_p2, %p747_p1 }
  0x3a   :  { %p750_p4 = pnand %p749_p3, %p743_p0 }
  0x3b   :  { %678 = vmatpush3.bf16.msra.mxu0 %v737_v53 }
  0x3c   :  { %679 = vmatprep.subr.bf16.mxu0 %v738_v54 }
  0x3f   :  { %680 = vmatpush3.bf16.msra.mxu0 %v739_v55 }
  0x42   :  { %544 = vmatmul.mubr.bf16.vlgmr.msra.gmra.mrb[4].mxu0 %v571_v56 }
  0xf5   :  { %v637_v57 = vpop.f32.mrb[0].mxu0 }
  0xf6   :  { %v638_v59 = vpop.f32.mrb[1].mxu0 }
  0xf7   :  { %v639_v60 = vadd.f32 %v638_v59, %v637_v57  ;;  %v640_v61 = vpop.f32.mrb[2].mxu0  ;;  %v659_v62 = vpop.f32.mrb[0].mxu1 }
  0xf8   :  { %v641_v63 = vpop.f32.mrb[3].mxu0  ;;  %v660_v0 = vpop.f32.mrb[1].mxu1 }
  0xf9   :  { %v466_v1 = vadd.f32 %v639_v60, %v566_v58  ;;  %v661_v2 = vadd.f32 %v660_v0, %v659_v62  ;;  %v662_v3 = vpop.f32.mrb[2].mxu1 }
  0xfa   :  { %v663_v4 = vpop.f32.mrb[3].mxu1 }
  0xfb   :  { %v506_v5 = vadd.f32 %v661_v2, %v466_v1 }
 0x115   :  { %v681_v6 = vpop.f32.mrb[4].mxu0 }
 0x116   :  { %v682_v7 = vpop.f32.mrb[5].mxu0 }
 0x117   :  { %v683_v8 = vadd.f32 %v682_v7, %v681_v6  ;;  %v684_v9 = vpop.f32.mrb[6].mxu0 }
 0x118   :  { %v685_v10 = vpop.f32.mrb[7].mxu0 }
 0x119   :  { %v546_v11 = vadd.f32 %v683_v8, %v506_v5 }
 0x11b   :  { %551 = vst [vmem:[#allocation2] sm:$0xff] %v546_v11 }
 0x11c   :  { %753 = shalt.err (!%p750_p4)
}
 0x11d   :  { %s754_s10 = scalar_lea.hbm %s958_s3, 128 }
 0x11e   :  { %p755_p5 = scmp.ne.s32.totalorder %s958_s3, %s754_s10  ;;  %p758_p6 = scmp.lt.u32.totalorder %s754_s10, %s958_s3 }
 0x120   :  { %p760_p7 = pnand %p758_p6, %p755_p5 }
 0x122   :  { %763 = shalt.err (!%p760_p7)
}
 0x123   :  { %561 = dma.vmem_to_hbm [thread:$0]  %s559_s7, 128, %s958_s3, [#allocation3]  }
 0x124   :  { %764 = dma.done.wait [#allocation3], 128  }
 0x125   :  { %765 = vsyncadd [#allocation3], 4294967168 }
 0x126   :  { %565 = vsyncpa [#allocation3], 1 }

</bundles_post_ra>
